<compile_context>
chip_gen: v5e
topology: v5e:2x2
jax: 0.10.0
libtpu: 0.0.40
codegen_flags: <defaults>
</compile_context>

<pallas_src>
import functools

import jax
import jax.numpy as jnp
from jax.experimental import pallas as pl
from jax.experimental.pallas import tpu as pltpu

_SQRT_HALF = 0.7071067811865476


def _round_up(x, m):
    return ((x + m - 1) // m) * m


def _mlp_kernel(x_ref, w1_ref, w2_ref, o_ref, acc_ref):
    # x_ref : (tm, E)  w1_ref : (E, tk)  w2_ref : (tk, E)
    # o_ref : (tm, E)  acc_ref: (tm, E) f32, resident across the H grid axis.
    k = pl.program_id(1)

    @pl.when(k == 0)
    def _():
        acc_ref[...] = jnp.zeros_like(acc_ref)

    # First projection for this H-chunk (full E contraction) on the MXU.
    h = jnp.dot(x_ref[...], w1_ref[...], preferred_element_type=jnp.float32)
    # Exact GELU (torch.nn.GELU default, approximate='none'):
    #   gelu(x) = 0.5 * x * (1 + erf(x / sqrt(2)))
    h = 0.5 * h * (1.0 + jax.lax.erf(h * jnp.float32(_SQRT_HALF)))
    # Second projection: accumulate this H-chunk's contribution to the output.
    acc_ref[...] += jnp.dot(h.astype(w2_ref.dtype), w2_ref[...],
                            preferred_element_type=jnp.float32)

    @pl.when(k == pl.num_programs(1) - 1)
    def _():
        o_ref[...] = acc_ref[...].astype(o_ref.dtype)


@functools.partial(jax.jit, static_argnames=("block_m", "block_h"))
def mlp_forward(x, w1, w2, *, block_m=256, block_h=512):
    """x: (..., E); w1: (E, H); w2: (H, E). Returns same shape/dtype as x."""
    orig_shape = x.shape
    E = orig_shape[-1]
    H = w1.shape[1]

    x2d = x.reshape(-1, E)
    M = x2d.shape[0]

    # ---- tile sizing (static) --------------------------------------------
    # Lane dims -> multiples of 128; sublane (row) dims -> multiples of 16
    # (covers both f32 and bf16 packing).  tm defaults to 256, tk to 512, so
    # they are multiples of the 256-wide MXU on v6e/v7x and 128 on v5e.
    E_pad = _round_up(E, 128)
    tm = _round_up(min(block_m, _round_up(M, 16)), 16)
    M_pad = _round_up(M, tm)
    tk = _round_up(min(block_h, _round_up(H, 128)), 128)
    H_pad = _round_up(H, tk)

    # ---- zero-pad to aligned shapes (numerically exact) --------------------
    if (M_pad, E_pad) != (M, E):
        x2d = jnp.pad(x2d, ((0, M_pad - M), (0, E_pad - E)))
    w1p = w1 if (E_pad, H_pad) == (E, H) else jnp.pad(
        w1, ((0, E_pad - E), (0, H_pad - H)))
    w2p = w2 if (H_pad, E_pad) == (H, E) else jnp.pad(
        w2, ((0, H_pad - H), (0, E_pad - E)))

    grid = (M_pad // tm, H_pad // tk)

    # ---- explicit VMEM budget: double-buffered tiles + f32 accumulator ----
    bx = jnp.dtype(x.dtype).itemsize
    bw = jnp.dtype(w1.dtype).itemsize
    vmem_needed = (2 * tm * E_pad * bx          # x tiles (double-buffered)
                   + 2 * tm * E_pad * bx        # out tiles
                   + 2 * E_pad * tk * bw        # W1 tiles
                   + 2 * tk * E_pad * bw        # W2 tiles
                   + tm * E_pad * 4)            # accumulator scratch
    vmem_limit = int(min(64 * 1024 * 1024,
                         max(2 * vmem_needed, 8 * 1024 * 1024)))

    cost = pl.CostEstimate(
        flops=4 * M * E * H,                    # two M*E*H matmuls
        transcendentals=M * H,                  # erf per hidden activation
        bytes_accessed=(M * E * bx + E * H * bw + H * E * bw + M * E * bx),
    )

    out = pl.pallas_call(
        _mlp_kernel,
        out_shape=jax.ShapeDtypeStruct((M_pad, E_pad), x.dtype),
        grid_spec=pltpu.PrefetchScalarGridSpec(
            num_scalar_prefetch=0,
            grid=grid,
            in_specs=[
                pl.BlockSpec((tm, E_pad), lambda i, k: (i, 0)),   # activations
                pl.BlockSpec((E_pad, tk), lambda i, k: (0, k)),   # W1 streamed over H
                pl.BlockSpec((tk, E_pad), lambda i, k: (k, 0)),   # W2 streamed over H
            ],
            out_specs=pl.BlockSpec((tm, E_pad), lambda i, k: (i, 0)),
            scratch_shapes=[pltpu.VMEM((tm, E_pad), jnp.float32)],
        ),
        compiler_params=pltpu.CompilerParams(
            dimension_semantics=("parallel", "arbitrary"),
            vmem_limit_bytes=vmem_limit,
        ),
        cost_estimate=cost,
    )(x2d, w1p, w2p)

    if (M_pad, E_pad) != (M, E):
        out = out[:M, :E]
    return out.reshape(orig_shape)


if __name__ == "__main__":
    # Small shapes consistent with the module: batch=2, seq=8, embed=32, hidden=64.
    batch, seq, embed_dims, hidden_dims = 2, 8, 32, 64

    key = jax.random.PRNGKey(0)
    kx, kw1, kw2 = jax.random.split(key, 3)

    x = jax.random.normal(kx, (batch, seq, embed_dims), dtype=jnp.float32)
    # Parameters stored as (in, out) so the kernel computes x @ W.
    w1 = (jax.random.normal(kw1, (embed_dims, hidden_dims), dtype=jnp.float32)
          * (1.0 / jnp.sqrt(embed_dims)))
    w2 = (jax.random.normal(kw2, (hidden_dims, embed_dims), dtype=jnp.float32)
          * (1.0 / jnp.sqrt(hidden_dims)))

    out = mlp_forward(x, w1, w2)
    jax.block_until_ready(out)

    # Sanity check against a pure-JAX reference of the same math
    # (exact-erf GELU, no bias, dropout is identity in eval mode).
    ref = jnp.dot(jax.nn.gelu(jnp.dot(x, w1), approximate=False), w2)
    assert out.shape == x.shape and out.dtype == x.dtype
    assert jnp.allclose(out, ref, atol=1e-5, rtol=1e-5)

    print("KERNEL_OK")
</pallas_src>

<mosaic_0001>
module attributes {stable_mosaic.version = 11 : i64} {
  func.func @_mlp_kernel(%arg0: i32, %arg1: i32, %arg2: memref<16x128xf32, #tpu.memory_space<vmem>>, %arg3: memref<128x128xf32, #tpu.memory_space<vmem>>, %arg4: memref<128x128xf32, #tpu.memory_space<vmem>>, %arg5: memref<16x128xf32, #tpu.memory_space<vmem>>, %arg6: memref<16x128xf32, #tpu.memory_space<vmem>>) attributes {dimension_semantics = [#tpu.dimension_semantics<parallel>, #tpu.dimension_semantics<arbitrary>], iteration_bounds = array<i64: 1, 1>, scalar_prefetch = 0 : i64, scratch_operands = 1 : i64, tpu.core_type = #tpu.core_type<tc>, window_params = [{transform_indices = @transform_0, window_bounds = array<i64: 16, 128>}, {transform_indices = @transform_1, window_bounds = array<i64: 128, 128>}, {transform_indices = @transform_2, window_bounds = array<i64: 128, 128>}, {transform_indices = @transform_3, window_bounds = array<i64: 16, 128>}]} {
    %c0_i32 = arith.constant 0 : i32
    %0 = arith.cmpi eq, %arg1, %c0_i32 : i32
    %1 = arith.extui %0 : i1 to i32
    %c0_i32_0 = arith.constant 0 : i32
    %2 = arith.cmpi ne, %1, %c0_i32_0 : i32
    scf.if %2 {
      %cst_16 = arith.constant 0.000000e+00 : f32
      %22 = vector.broadcast %cst_16 : f32 to vector<16x128xf32>
      %c0_17 = arith.constant 0 : index
      %c0_18 = arith.constant 0 : index
      %23 = vector.load %arg6[%c0_17, %c0_18] : memref<16x128xf32, #tpu.memory_space<vmem>>, vector<16x128xf32>
      tpu.vector_store %arg6[%c0_17, %c0_18], %22 {strides = array<i32>} : memref<16x128xf32, #tpu.memory_space<vmem>>, vector<16x128xf32>,
    } else {
    }
    %c0 = arith.constant 0 : index
    %c0_1 = arith.constant 0 : index
    %3 = vector.load %arg2[%c0, %c0_1] : memref<16x128xf32, #tpu.memory_space<vmem>>, vector<16x128xf32>
    %c0_2 = arith.constant 0 : index
    %c0_3 = arith.constant 0 : index
    %4 = vector.load %arg3[%c0_2, %c0_3] : memref<128x128xf32, #tpu.memory_space<vmem>>, vector<128x128xf32>
    %cst = arith.constant dense<0.000000e+00> : vector<16x128xf32>
    %5 = tpu.matmul %3, %4, %cst {dimension_numbers = #tpu.dot_dimension_numbers<[1], [0], [0], [1], [0, 0, 1, 1], [], []>} : vector<16x128xf32>, vector<128x128xf32>, vector<16x128xf32> -> vector<16x128xf32>
    %cst_4 = arith.constant 5.000000e-01 : f32
    %6 = vector.broadcast %cst_4 : f32 to vector<16x128xf32>
    %7 = arith.mulf %6, %5 : vector<16x128xf32>
    %cst_5 = arith.constant 0.707106769 : f32
    %8 = vector.broadcast %cst_5 : f32 to vector<16x128xf32>
    %9 = arith.mulf %5, %8 : vector<16x128xf32>
    %10 = math.erf %9 : vector<16x128xf32>
    %cst_6 = arith.constant 1.000000e+00 : f32
    %11 = vector.broadcast %cst_6 : f32 to vector<16x128xf32>
    %12 = arith.addf %11, %10 : vector<16x128xf32>
    %13 = arith.mulf %7, %12 : vector<16x128xf32>
    %c0_7 = arith.constant 0 : index
    %c0_8 = arith.constant 0 : index
    %14 = vector.load %arg6[%c0_7, %c0_8] : memref<16x128xf32, #tpu.memory_space<vmem>>, vector<16x128xf32>
    %c0_9 = arith.constant 0 : index
    %c0_10 = arith.constant 0 : index
    %15 = vector.load %arg4[%c0_9, %c0_10] : memref<128x128xf32, #tpu.memory_space<vmem>>, vector<128x128xf32>
    %cst_11 = arith.constant dense<0.000000e+00> : vector<16x128xf32>
    %16 = tpu.matmul %13, %15, %cst_11 {dimension_numbers = #tpu.dot_dimension_numbers<[1], [0], [0], [1], [0, 0, 1, 1], [], []>} : vector<16x128xf32>, vector<128x128xf32>, vector<16x128xf32> -> vector<16x128xf32>
    %17 = arith.addf %14, %16 : vector<16x128xf32>
    %c0_12 = arith.constant 0 : index
    %c0_13 = arith.constant 0 : index
    %18 = vector.load %arg6[%c0_12, %c0_13] : memref<16x128xf32, #tpu.memory_space<vmem>>, vector<16x128xf32>
    tpu.vector_store %arg6[%c0_12, %c0_13], %17 {strides = array<i32>} : memref<16x128xf32, #tpu.memory_space<vmem>>, vector<16x128xf32>,
    %c0_i32_14 = arith.constant 0 : i32
    %19 = arith.cmpi eq, %arg1, %c0_i32_14 : i32
    %20 = arith.extui %19 : i1 to i32
    %c0_i32_15 = arith.constant 0 : i32
    %21 = arith.cmpi ne, %20, %c0_i32_15 : i32
    scf.if %21 {
      %c0_16 = arith.constant 0 : index
      %c0_17 = arith.constant 0 : index
      %22 = vector.load %arg6[%c0_16, %c0_17] : memref<16x128xf32, #tpu.memory_space<vmem>>, vector<16x128xf32>
      %c0_18 = arith.constant 0 : index
      %c0_19 = arith.constant 0 : index
      %23 = vector.load %arg5[%c0_18, %c0_19] : memref<16x128xf32, #tpu.memory_space<vmem>>, vector<16x128xf32>
      tpu.vector_store %arg5[%c0_18, %c0_19], %22 {strides = array<i32>} : memref<16x128xf32, #tpu.memory_space<vmem>>, vector<16x128xf32>,
    } else {
    }
    return
  }
  func.func @transform_0(%arg0: i32, %arg1: i32) -> (i32, i32) {
    %c0_i32 = arith.constant 0 : i32
    %c0_i32_0 = arith.constant 0 : i32
    return %arg0, %c0_i32 : i32, i32
  }
  func.func @transform_1(%arg0: i32, %arg1: i32) -> (i32, i32) {
    %c0_i32 = arith.constant 0 : i32
    %c0_i32_0 = arith.constant 0 : i32
    return %c0_i32, %arg1 : i32, i32
  }
  func.func @transform_2(%arg0: i32, %arg1: i32) -> (i32, i32) {
    %c0_i32 = arith.constant 0 : i32
    %c0_i32_0 = arith.constant 0 : i32
    return %arg1, %c0_i32 : i32, i32
  }
  func.func @transform_3(%arg0: i32, %arg1: i32) -> (i32, i32) {
    %c0_i32 = arith.constant 0 : i32
    %c0_i32_0 = arith.constant 0 : i32
    return %arg0, %c0_i32 : i32, i32
  }
}

</mosaic_0001>

<bundles_post_ra>
// kernel: mlp_forward.1
= control target key start
LH: loop header
LB: loop body
LE: loop exit
PB: predicated region body
PF: predicated region fallthrough
CT: control target
= control target key end

     0   :  { %s401_s1 = inlined_call_operand.vmem [shape: f32[128,128], index: 1, kind: input, shape index: {}]   ;;  %s402_s0 = inlined_call_operand.vmem [shape: f32[16,128], index: 0, kind: input, shape index: {}]   ;;  %s403_s2 = inlined_call_operand.vmem [shape: f32[128,128], index: 2, kind: input, shape index: {}]   ;;  %s404_s3 = inlined_call_operand.vmem [shape: f32[16,128], index: 3, kind: output, shape index: {}]  }
   0x1   :  { %v37_v0 = vld [vmem:[%s401_s1 + $0x78] sm:$0xff]  ;;  %v36_v1 = vld [vmem:[%s401_s1 + $0x70] sm:$0xff]  ;;  %v35_v2 = vld [vmem:[%s401_s1 + $0x68] sm:$0xff] }
   0x2   :  { %38 = vmatpush.msra.mxu0 %v37_v0  ;;  %207 = vmatpush.msra.mxu2 %v37_v0  ;;  %v34_v3 = vld [vmem:[%s401_s1 + $0x60] sm:$0xff]  ;;  %v33_v4 = vld [vmem:[%s401_s1 + $0x58] sm:$0xff]  ;;  %v32_v5 = vld [vmem:[%s401_s1 + $0x50] sm:$0xff] }
   0x3   :  { %v31_v6 = vld [vmem:[%s401_s1 + $0x48] sm:$0xff]  ;;  %v30_v7 = vld [vmem:[%s401_s1 + $0x40] sm:$0xff]  ;;  %v29_v8 = vld [vmem:[%s401_s1 + $0x38] sm:$0xff] }
   0x4   :  { %39 = vmatpush.msra.mxu0 %v36_v1  ;;  %208 = vmatpush.msra.mxu2 %v36_v1  ;;  %v28_v9 = vld [vmem:[%s401_s1 + $0x30] sm:$0xff]  ;;  %v27_v10 = vld [vmem:[%s401_s1 + $0x28] sm:$0xff]  ;;  %v26_v11 = vld [vmem:[%s401_s1 + $0x20] sm:$0xff] }
   0x5   :  { %v25_v12 = vld [vmem:[%s401_s1 + $0x18] sm:$0xff]  ;;  %v24_v13 = vld [vmem:[%s401_s1 + $0x10] sm:$0xff]  ;;  %v23_v14 = vld [vmem:[%s401_s1 + $0x8] sm:$0xff] }
   0x6   :  { %40 = vmatpush.msra.mxu0 %v35_v2  ;;  %209 = vmatpush.msra.mxu2 %v35_v2  ;;  %v22_v15 = vld [vmem:[%s401_s1] sm:$0xff]  ;;  %v21_v17 = vld [vmem:[%s402_s0 + $0x8] sm:$0xff]  ;;  %v166_v18 = vld [vmem:[%s403_s2 + $0x78] sm:$0xff] }
   0x7   :  { %v20_v16 = vld [vmem:[%s402_s0] sm:$0xff]  ;;  %167 = vmatpush.msra.mxu1 %v166_v18  ;;  %223 = vmatpush.msra.mxu3 %v166_v18  ;;  %v165_v19 = vld [vmem:[%s403_s2 + $0x70] sm:$0xff]  ;;  %v164_v20 = vld [vmem:[%s403_s2 + $0x68] sm:$0xff] }
   0x8   :  { %41 = vmatpush.msra.mxu0 %v34_v3  ;;  %210 = vmatpush.msra.mxu2 %v34_v3  ;;  %v163_v21 = vld [vmem:[%s403_s2 + $0x60] sm:$0xff]  ;;  %v162_v22 = vld [vmem:[%s403_s2 + $0x58] sm:$0xff]  ;;  %v161_v23 = vld [vmem:[%s403_s2 + $0x50] sm:$0xff] }
   0x9   :  { %168 = vmatpush.msra.mxu1 %v165_v19  ;;  %224 = vmatpush.msra.mxu3 %v165_v19  ;;  %v160_v25 = vld [vmem:[%s403_s2 + $0x48] sm:$0xff]  ;;  %v159_v27 = vld [vmem:[%s403_s2 + $0x40] sm:$0xff]  ;;  %v158_v28 = vld [vmem:[%s403_s2 + $0x38] sm:$0xff] }
   0xa   :  { %42 = vmatpush.msra.mxu0 %v33_v4  ;;  %211 = vmatpush.msra.mxu2 %v33_v4  ;;  %v157_v30 = vld [vmem:[%s403_s2 + $0x30] sm:$0xff]  ;;  %v156_v33 = vld [vmem:[%s403_s2 + $0x28] sm:$0xff]  ;;  %v155_v36 = vld [vmem:[%s403_s2 + $0x20] sm:$0xff] }
   0xb   :  { %169 = vmatpush.msra.mxu1 %v164_v20  ;;  %225 = vmatpush.msra.mxu3 %v164_v20  ;;  %v154_v40 = vld [vmem:[%s403_s2 + $0x18] sm:$0xff]  ;;  %v153_v44 = vld [vmem:[%s403_s2 + $0x10] sm:$0xff]  ;;  %v152_v49 = vld [vmem:[%s403_s2 + $0x8] sm:$0xff] }
   0xc   :  { %43 = vmatpush.msra.mxu0 %v32_v5  ;;  %212 = vmatpush.msra.mxu2 %v32_v5  ;;  %v151_v53 = vld [vmem:[%s403_s2] sm:$0xff] }
   0xd   :  { %170 = vmatpush.msra.mxu1 %v163_v21  ;;  %226 = vmatpush.msra.mxu3 %v163_v21 }
   0xe   :  { %44 = vmatpush.msra.mxu0 %v31_v6  ;;  %213 = vmatpush.msra.mxu2 %v31_v6 }
   0xf   :  { %171 = vmatpush.msra.mxu1 %v162_v22  ;;  %227 = vmatpush.msra.mxu3 %v162_v22 }
  0x10   :  { %45 = vmatpush.msra.mxu0 %v30_v7  ;;  %214 = vmatpush.msra.mxu2 %v30_v7 }
  0x11   :  { %172 = vmatpush.msra.mxu1 %v161_v23  ;;  %228 = vmatpush.msra.mxu3 %v161_v23 }
  0x12   :  { %46 = vmatpush.msra.mxu0 %v29_v8  ;;  %215 = vmatpush.msra.mxu2 %v29_v8 }
  0x13   :  { %173 = vmatpush.msra.mxu1 %v160_v25  ;;  %229 = vmatpush.msra.mxu3 %v160_v25 }
  0x14   :  { %47 = vmatpush.msra.mxu0 %v28_v9  ;;  %216 = vmatpush.msra.mxu2 %v28_v9 }
  0x15   :  { %174 = vmatpush.msra.mxu1 %v159_v27  ;;  %230 = vmatpush.msra.mxu3 %v159_v27 }
  0x16   :  { %48 = vmatpush.msra.mxu0 %v27_v10  ;;  %217 = vmatpush.msra.mxu2 %v27_v10 }
  0x17   :  { %175 = vmatpush.msra.mxu1 %v158_v28  ;;  %231 = vmatpush.msra.mxu3 %v158_v28 }
  0x18   :  { %49 = vmatpush.msra.mxu0 %v26_v11  ;;  %218 = vmatpush.msra.mxu2 %v26_v11 }
  0x19   :  { %176 = vmatpush.msra.mxu1 %v157_v30  ;;  %232 = vmatpush.msra.mxu3 %v157_v30 }
  0x1a   :  { %50 = vmatpush.msra.mxu0 %v25_v12  ;;  %219 = vmatpush.msra.mxu2 %v25_v12 }
  0x1b   :  { %177 = vmatpush.msra.mxu1 %v156_v33  ;;  %233 = vmatpush.msra.mxu3 %v156_v33 }
  0x1c   :  { %51 = vmatpush.msra.mxu0 %v24_v13  ;;  %220 = vmatpush.msra.mxu2 %v24_v13 }
  0x1d   :  { %178 = vmatpush.msra.mxu1 %v155_v36  ;;  %234 = vmatpush.msra.mxu3 %v155_v36 }
  0x1e   :  { %52 = vmatpush.msra.mxu0 %v23_v14  ;;  %221 = vmatpush.msra.mxu2 %v23_v14 }
  0x1f   :  { %179 = vmatpush.msra.mxu1 %v154_v40  ;;  %235 = vmatpush.msra.mxu3 %v154_v40 }
  0x20   :  { %53 = vmatpush.msra.mxu0 %v22_v15  ;;  %222 = vmatpush.msra.mxu2 %v22_v15 }
  0x21   :  { %54 = vmatmul.f32.vlgmr.msra.gmra.mxu0 %v20_v16  ;;  %57 = vmatmul.f32.vlgmr.msra.gmra.mxu2 %v21_v17 }
  0x22   :  { %180 = vmatpush.msra.mxu1 %v153_v44  ;;  %236 = vmatpush.msra.mxu3 %v153_v44 }
  0x24   :  { %181 = vmatpush.msra.mxu1 %v152_v49  ;;  %237 = vmatpush.msra.mxu3 %v152_v49 }
  0x26   :  { %182 = vmatpush.msra.mxu1 %v151_v53  ;;  %238 = vmatpush.msra.mxu3 %v151_v53 }
  0x9e   :  { %v335_v24 = vpop.f32.mrf.mxu0 }
  0x9f   :  { %v341_v26 = vmul.f32 0.70710677, %v335_v24  ;;  %v61_v44 = vmul.f32 0.5, %v335_v24 }
  0xa1   :  { %v65_v29 = vmul.f32 %v341_v26, %v341_v26 }
  0xa3   :  { %v354_v31 = vmin.f32 %v65_v29, 16.0 }
  0xa4   :  { %v356_v32 = vpop.f32.mrf.mxu2 }
  0xa5   :  { %v67_v34 = vmul.f32 2.1237322e-06, %v354_v31  ;;  %v363_v35 = vmul.f32 0.70710677, %v356_v32  ;;  %v78_v37 = vmul.f32 3.8918573e-05, %v354_v31 }
  0xa7   :  { %v68_v38 = vadd.f32 0.00028619796, %v67_v34  ;;  %v105_v39 = vmul.f32 %v363_v35, %v363_v35  ;;  %v79_v41 = vadd.f32 0.001143296, %v78_v37 }
  0xa9   :  { %v69_v42 = vmul.f32 %v68_v38, %v354_v31  ;;  %v106_v43 = vmin.f32 %v105_v39, 16.0  ;;  %v80_v45 = vmul.f32 %v79_v41, %v354_v31 }
  0xab   :  { %v107_v46 = vmul.f32 2.1237322e-06, %v106_v43  ;;  %v118_v47 = vmul.f32 3.8918573e-05, %v106_v43  ;;  %v70_v48 = vadd.f32 0.0036580483, %v69_v42 }
  0xac   :  { %v81_v50 = vadd.f32 0.014752088, %v80_v45 }
  0xad   :  { %v108_v51 = vadd.f32 0.00028619796, %v107_v46  ;;  %v119_v52 = vadd.f32 0.001143296, %v118_v47  ;;  %v71_v57 = vmul.f32 %v70_v48, %v354_v31 }
  0xae   :  { %v82_v54 = vmul.f32 %v81_v50, %v354_v31  ;;  %v62_v50 = vmul.f32 0.5, %v356_v32 }
  0xaf   :  { %v109_v55 = vmul.f32 %v108_v51, %v106_v43  ;;  %v120_v56 = vmul.f32 %v119_v52, %v106_v43  ;;  %v72_v63 = vadd.f32 0.05243302, %v71_v57 }
  0xb0   :  { %v83_v58 = vadd.f32 0.112945676, %v82_v54 }
  0xb1   :  { %v110_v59 = vadd.f32 0.0036580483, %v109_v55  ;;  %v121_v60 = vadd.f32 0.014752088, %v120_v56  ;;  %v73_v5 = vmul.f32 %v72_v63, %v354_v31 }
  0xb2   :  { %v84_v61 = vmul.f32 %v83_v58, %v354_v31 }
  0xb3   :  { %v122_v62 = vmul.f32 %v121_v60, %v106_v43  ;;  %v111_v1 = vmul.f32 %v110_v59, %v106_v43  ;;  %v74_v10 = vadd.f32 0.18741608, %v73_v5 }
  0xb4   :  { %v85_v0 = vadd.f32 0.4994258, %v84_v61 }
  0xb5   :  { %v123_v2 = vadd.f32 0.112945676, %v122_v62  ;;  %v112_v7 = vadd.f32 0.05243302, %v111_v1  ;;  %v75_v14 = vmul.f32 %v74_v10, %v354_v31 }
  0xb6   :  { %v86_v3 = vmul.f32 %v85_v0, %v354_v31 }
  0xb7   :  { %v124_v4 = vmul.f32 %v123_v2, %v106_v43  ;;  %v113_v11 = vmul.f32 %v112_v7, %v106_v43  ;;  %v76_v18 = vadd.f32 1.1283791, %v75_v14 }
  0xb8   :  { %v87_v6 = vadd.f32 1.0, %v86_v3 }
  0xb9   :  { %v125_v8 = vadd.f32 0.4994258, %v124_v4  ;;  %v114_v15 = vadd.f32 0.18741608, %v113_v11  ;;  %v77_v28 = vmul.f32 %v76_v18, %v341_v26 }
  0xba   :  { %239 = vrcp.f32 %v87_v6  ;;  %v99_v19 = vand.u32 2147483648, %v87_v6  ;;  %v97_v23 = vand.u32 2147483647, %v87_v6  ;;  %vm93_vm1 = vweird.f32 %v87_v6 }
  0xbb   :  { %v126_v9 = vmul.f32 %v125_v8, %v106_v43  ;;  %v115_v21 = vmul.f32 %v114_v15, %v106_v43 }
  0xbc   :  { %v100_v29 = vor.u32 1.1754944e-38, %v99_v19  ;;  %vm98_vm3 = vcmp.eq.f32.partialorder %v97_v23, 8.507059e+37 }
  0xbd   :  { %v127_v12 = vadd.f32 1.0, %v126_v9  ;;  %v116_v33 = vadd.f32 1.1283791, %v115_v21 }
  0xbf   :  { %241 = vrcp.f32 %v127_v12  ;;  %v139_v34 = vand.u32 2147483648, %v127_v12  ;;  %v137_v38 = vand.u32 2147483647, %v127_v12  ;;  %vm133_vm5 = vweird.f32 %v127_v12 }
  0xc0   :  { %v240_v13 = vpop.eup %239  ;;  %v117_v43 = vmul.f32 %v116_v33, %v363_v35 }
  0xc1   :  { %v89_v16 = vmul.f32 %v240_v13, %v87_v6  ;;  %vm94_vm0 = vweird.f32 %v240_v13  ;;  %v140_v42 = vor.u32 1.1754944e-38, %v139_v34  ;;  %vm138_vm7 = vcmp.eq.f32.partialorder %v137_v38, 8.507059e+37 }
  0xc2   :  { %vm95_vm2 = vmor %vm93_vm1, %vm94_vm0 }
  0xc3   :  { %v90_v17 = vsub.f32 1.0, %v89_v16 }
  0xc5   :  { %v242_v20 = vpop.eup %241  ;;  %v91_v22 = vmul.f32 %v240_v13, %v90_v17 }
  0xc6   :  { %v129_v25 = vmul.f32 %v242_v20, %v127_v12  ;;  %vm134_vm4 = vweird.f32 %v242_v20 }
  0xc7   :  { %v92_v27 = vadd.f32 %v240_v13, %v91_v22  ;;  %vm135_vm6 = vmor %vm133_vm5, %vm134_vm4 }
  0xc8   :  { %v130_v30 = vsub.f32 1.0, %v129_v25 }
  0xc9   :  { %v96_v31 = vsel %vm95_vm2, %v240_v13, %v92_v27 }
  0xca   :  { %v101_v36 = vsel %vm98_vm3, %v100_v29, %v96_v31  ;;  %v131_v37 = vmul.f32 %v242_v20, %v130_v30 }
  0xcb   :  { %v102_v39 = vmul.f32 %v101_v36, %v77_v28 }
  0xcc   :  { %v132_v40 = vadd.f32 %v242_v20, %v131_v37 }
  0xcd   :  { %v205_v41 = vclamps-f32 %v102_v39, 1.0 }
  0xce   :  { %v136_v26 = vsel %vm135_vm6, %v242_v20, %v132_v40 }
  0xcf   :  { %v145_v45 = vadd.f32 1.0, %v205_v41  ;;  %v141_v46 = vsel %vm138_vm7, %v140_v42, %v136_v26 }
  0xd0   :  { %v142_v47 = vmul.f32 %v141_v46, %v117_v43 }
  0xd1   :  { %v147_v48 = vmul.f32 %v145_v45, %v61_v44 }
  0xd2   :  { %v206_v49 = vclamps-f32 %v142_v47, 1.0 }
  0xd3   :  { %183 = vmatmul.f32.vlgmr.msra.gmra.mxu1 %v147_v48 }
  0xd4   :  { %v146_v51 = vadd.f32 1.0, %v206_v49 }
  0xd6   :  { %v148_v52 = vmul.f32 %v146_v51, %v62_v50 }
  0xd8   :  { %186 = vmatmul.f32.vlgmr.msra.gmra.mxu3 %v148_v52 }
 0x150   :  { %v184_v53 = vpop.f32.mrf.mxu1 }
 0x151   :  { %199 = vst [vmem:[%s404_s3] sm:$0xff] %v184_v53 }
 0x15b   :  { %v187_v35 = vpop.f32.mrf.mxu3 }
 0x15c   :  { %200 = vst [vmem:[%s404_s3 + $0x8] sm:$0xff] %v187_v35 }

</bundles_post_ra>
